<compile_context>
chip_gen: v7x
topology: tpu7x:2x2x1
jax: 0.10.0
libtpu: 0.0.40
codegen_flags: <defaults>
</compile_context>

<pallas_src>
import functools

import jax
import jax.numpy as jnp
from jax.experimental import pallas as pl
from jax.experimental.pallas import tpu as pltpu


# ----------------------------- Pallas kernel --------------------------------
def _add_coords_kernel(coords_ref, x_ref, o_ref, *, C, extra):
    # coords_ref: [extra, TL]   x_ref: [TB, C, TL]   o_ref: [TB, C+extra, TL]
    o_ref[:, 0:C, :] = x_ref[...]
    TB = o_ref.shape[0]
    for b in range(TB):  # TB <= 8, fully unrolled static loop
        o_ref[b, C:C + extra, :] = coords_ref[...]


# --------------------------- tiling heuristics -------------------------------
def _vmem_capacity_bytes():
    """Per-core VMEM capacity; conservative fallback if the query fails."""
    try:
        info = pltpu.get_tpu_info()
        for name in ("vmem_capacity_bytes", "vmem_size_bytes", "vmem_bytes"):
            v = getattr(info, name, None)
            if v:
                return int(v)
    except Exception:
        pass
    return 64 << 20  # v7x per-TensorCore VMEM (smallest of the three gens)


def _round_up(n, m):
    return -(-n // m) * m


def _step_vmem_bytes(tb, tl, C, Cout, extra, itemsize):
    """Double-buffered VMEM footprint of one grid step (dtype/packing aware)."""
    sub = max(8, 32 // itemsize)           # sublane packing: 8 f32 / 16 bf16 / 32 i8
    lanes = _round_up(tl, 128)
    per_buf = (tb * (_round_up(C, sub) + _round_up(Cout, sub))
               + _round_up(extra, sub)) * lanes * itemsize
    return 2 * per_buf                     # BlockSpec pipeline double-buffers


def _pick_tiles(B, C, Cout, extra, HW, itemsize, budget_bytes):
    """Pick (TB, TL): batch block and flattened-spatial block sizes."""
    def fits(tb, tl):
        return _step_vmem_bytes(tb, tl, C, Cout, extra, itemsize) <= budget_bytes

    if fits(1, HW) or HW <= 128:
        # Whole image per step; also block the batch so tiny images do not pay
        # the fixed per-grid-step overhead B times.
        tb = 1
        for d in range(min(B, 8), 1, -1):
            if B % d == 0 and fits(d, HW):
                tb = d
                break
        return tb, HW

    # Tile the flattened spatial dim in lane-dense multiples of 128.
    per_lane = max(1, _step_vmem_bytes(1, 128, C, Cout, extra, itemsize) // 128)
    max_tl = max(128, (budget_bytes // per_lane) // 128 * 128)
    max_tl = min(max_tl, (HW // 128) * 128)
    # Prefer an exact divisor of HW (no ragged tail block); otherwise use the
    # largest multiple of 128 and let Pallas mask the ragged last block.
    for tl in range(max_tl, 127, -128):
        if HW % tl == 0:
            return 1, tl
    return 1, max_tl


# ------------------------------ JAX wrapper -----------------------------------
class AddCoordsPallas:
    def __init__(self, with_r=False, *, vmem_budget_bytes=None):
        self.with_r = with_r
        self._budget_override = vmem_budget_bytes  # for tests / tuning

    def __call__(self, x):
        B, C, H, W = x.shape
        extra = 3 if self.with_r else 2
        Cout = C + extra
        HW = H * W
        itemsize = jnp.dtype(x.dtype).itemsize

        # Generation-aware budget: ~1/3 of per-core VMEM, capped at 48 MiB
        # (v5e/v6e: ~42 MiB of 128 MiB; v7x: ~21 MiB of 64 MiB).
        vmem_cap = _vmem_capacity_bytes()
        budget = self._budget_override or min(vmem_cap // 3, 48 << 20)

        TB, TL = _pick_tiles(B, C, Cout, extra, HW, itemsize, budget)
        n_t = pl.cdiv(HW, TL)
        n_b = pl.cdiv(B, TB)

        step_bytes = _step_vmem_bytes(TB, TL, C, Cout, extra, itemsize)
        vmem_limit = int(min(vmem_cap, max(step_bytes + (8 << 20), 32 << 20)))

        # Coordinate channels, computed once (tiny: extra * H * W elements) and
        # streamed into the kernel; same op order as the torch module so the
        # result is bit-identical to the reference.
        col = jnp.arange(W, dtype=jnp.float32)
        row = jnp.arange(H, dtype=jnp.float32)
        xx = jnp.broadcast_to(col[None, :], (H, W)) / max(W - 1, 1) * 2.0 - 1.0
        yy = jnp.broadcast_to(row[:, None], (H, W)) / max(H - 1, 1) * 2.0 - 1.0
        chans = [xx, yy]
        if self.with_r:
            chans.append(jnp.sqrt(xx * xx + yy * yy))
        coords = jnp.stack(chans, axis=0).reshape(extra, HW).astype(x.dtype)

        x3 = x.reshape(B, C, HW)           # free, contiguous reshape

        kernel = functools.partial(_add_coords_kernel, C=C, extra=extra)

        out3 = pl.pallas_call(
            kernel,
            out_shape=jax.ShapeDtypeStruct((B, Cout, HW), x.dtype),
            grid=(n_t, n_b),               # spatial OUTER -> coords DMA'd once
            in_specs=[
                pl.BlockSpec((extra, TL), lambda t, b: (0, t)),
                pl.BlockSpec((TB, C, TL), lambda t, b: (b, 0, t)),
            ],
            out_specs=pl.BlockSpec((TB, Cout, TL), lambda t, b: (b, 0, t)),
            compiler_params=pltpu.CompilerParams(
                dimension_semantics=("parallel", "parallel"),
                vmem_limit_bytes=vmem_limit),
            cost_estimate=pl.CostEstimate(
                flops=0,
                transcendentals=0,
                bytes_accessed=itemsize * (B * C * HW + extra * HW
                                           + B * Cout * HW)),
        )(coords, x3)
        return out3.reshape(B, Cout, H, W)


# ------------------------- pure-JAX reference --------------------------------
def _reference(x, with_r):
    B, C, H, W = x.shape
    col = jnp.arange(W, dtype=jnp.float32)
    row = jnp.arange(H, dtype=jnp.float32)
    xx = jnp.broadcast_to(col[None, :], (H, W)) / max(W - 1, 1) * 2.0 - 1.0
    yy = jnp.broadcast_to(row[:, None], (H, W)) / max(H - 1, 1) * 2.0 - 1.0
    xx_c = jnp.broadcast_to(xx[None, None], (B, 1, H, W)).astype(x.dtype)
    yy_c = jnp.broadcast_to(yy[None, None], (B, 1, H, W)).astype(x.dtype)
    ret = jnp.concatenate([x, xx_c, yy_c], axis=1)
    if with_r:
        rr = jnp.sqrt(xx * xx + yy * yy)
        rr_c = jnp.broadcast_to(rr[None, None], (B, 1, H, W)).astype(x.dtype)
        ret = jnp.concatenate([ret, rr_c], axis=1)
    return ret


if __name__ == "__main__":
    key = jax.random.PRNGKey(0)

    def check(B, C, H, W, with_r, budget=None):
        k = jax.random.fold_in(key, 1000 * H + 10 * C + int(with_r))
        x = jax.random.normal(k, (B, C, H, W), dtype=jnp.float32)
        mod = AddCoordsPallas(with_r=with_r, vmem_budget_bytes=budget)
        y = jax.block_until_ready(mod(x))
        ref = _reference(x, with_r)
        assert y.shape == ref.shape, (y.shape, ref.shape)
        err = float(jnp.max(jnp.abs(y - ref)))
        assert jnp.allclose(y, ref, rtol=1e-6, atol=1e-6), err

    # Main small config from the spec (square images, as the torch module requires).
    check(2, 4, 16, 16, with_r=False)
    check(2, 4, 16, 16, with_r=True)
    # Batch-blocked path (TB > 1) with odd channel count / non-128-multiple HW.
    check(4, 5, 24, 24, with_r=True)
    # Force the spatial-tiling path (TL < H*W, multiple of 128) via a tiny budget.
    check(2, 4, 32, 32, with_r=False, budget=64 << 10)

    print("KERNEL_OK")
</pallas_src>

<mosaic_0001>
module attributes {stable_mosaic.version = 11 : i64} {
  func.func @_add_coords_kernel(%arg0: i32, %arg1: i32, %arg2: memref<2x256xf32, #tpu.memory_space<vmem>>, %arg3: memref<2x4x256xf32, #tpu.memory_space<vmem>>, %arg4: memref<2x6x256xf32, #tpu.memory_space<vmem>>) attributes {dimension_semantics = [#tpu.dimension_semantics<parallel>, #tpu.dimension_semantics<parallel>], iteration_bounds = array<i64: 1, 1>, scalar_prefetch = 0 : i64, scratch_operands = 0 : i64, tpu.core_type = #tpu.core_type<tc>, window_params = [{transform_indices = @transform_0, window_bounds = array<i64: 2, 256>}, {transform_indices = @transform_1, window_bounds = array<i64: 2, 4, 256>}, {transform_indices = @transform_2, window_bounds = array<i64: 2, 6, 256>}]} {
    %c0 = arith.constant 0 : index
    %c0_0 = arith.constant 0 : index
    %c0_1 = arith.constant 0 : index
    %0 = vector.load %arg3[%c0, %c0_0, %c0_1] : memref<2x4x256xf32, #tpu.memory_space<vmem>>, vector<2x4x256xf32>
    %c0_2 = arith.constant 0 : index
    %c0_3 = arith.constant 0 : index
    %c0_4 = arith.constant 0 : index
    %1 = vector.load %arg4[%c0_2, %c0_3, %c0_4] : memref<2x6x256xf32, #tpu.memory_space<vmem>>, vector<2x4x256xf32>
    tpu.vector_store %arg4[%c0_2, %c0_3, %c0_4], %0 {strides = array<i32>} : memref<2x6x256xf32, #tpu.memory_space<vmem>>, vector<2x4x256xf32>,
    %c0_5 = arith.constant 0 : index
    %c0_6 = arith.constant 0 : index
    %2 = vector.load %arg2[%c0_5, %c0_6] : memref<2x256xf32, #tpu.memory_space<vmem>>, vector<2x256xf32>
    %c0_7 = arith.constant 0 : index
    %c4 = arith.constant 4 : index
    %c0_8 = arith.constant 0 : index
    %3 = vector.load %arg4[%c0_7, %c4, %c0_8] : memref<2x6x256xf32, #tpu.memory_space<vmem>>, vector<1x2x256xf32>
    %4 = vector.shape_cast %3 : vector<1x2x256xf32> to vector<2x256xf32>
    %5 = vector.shape_cast %2 : vector<2x256xf32> to vector<1x2x256xf32>
    tpu.vector_store %arg4[%c0_7, %c4, %c0_8], %5 {strides = array<i32>} : memref<2x6x256xf32, #tpu.memory_space<vmem>>, vector<1x2x256xf32>,
    %c0_9 = arith.constant 0 : index
    %c0_10 = arith.constant 0 : index
    %6 = vector.load %arg2[%c0_9, %c0_10] : memref<2x256xf32, #tpu.memory_space<vmem>>, vector<2x256xf32>
    %c1 = arith.constant 1 : index
    %c4_11 = arith.constant 4 : index
    %c0_12 = arith.constant 0 : index
    %7 = vector.load %arg4[%c1, %c4_11, %c0_12] : memref<2x6x256xf32, #tpu.memory_space<vmem>>, vector<1x2x256xf32>
    %8 = vector.shape_cast %7 : vector<1x2x256xf32> to vector<2x256xf32>
    %9 = vector.shape_cast %6 : vector<2x256xf32> to vector<1x2x256xf32>
    tpu.vector_store %arg4[%c1, %c4_11, %c0_12], %9 {strides = array<i32>} : memref<2x6x256xf32, #tpu.memory_space<vmem>>, vector<1x2x256xf32>,
    return
  }
  func.func @transform_0(%arg0: i32, %arg1: i32) -> (i32, i32) {
    %c0_i32 = arith.constant 0 : i32
    %c0_i32_0 = arith.constant 0 : i32
    return %c0_i32, %arg0 : i32, i32
  }
  func.func @transform_1(%arg0: i32, %arg1: i32) -> (i32, i32, i32) {
    %c0_i32 = arith.constant 0 : i32
    %c0_i32_0 = arith.constant 0 : i32
    return %arg1, %c0_i32, %arg0 : i32, i32, i32
  }
  func.func @transform_2(%arg0: i32, %arg1: i32) -> (i32, i32, i32) {
    %c0_i32 = arith.constant 0 : i32
    %c0_i32_0 = arith.constant 0 : i32
    return %arg1, %c0_i32, %arg0 : i32, i32, i32
  }
}

</mosaic_0001>

<bundles_post_ra>
// kernel: tpu_custom_call.1
= control target key start
LH: loop header
LB: loop body
LE: loop exit
PB: predicated region body
PF: predicated region fallthrough
CT: control target
= control target key end

     0   :  { %7 = vsyncpa [#allocation3], 0  ;;  %s216_s0 = inlined_call_operand.hbm [shape: f32[2,256], index: 0, kind: input, shape index: {}]   ;;  %s217_s1 = inlined_call_operand.hbm [shape: f32[2,4,256], index: 1, kind: input, shape index: {}]   ;;  %s218_s2 = inlined_call_operand.vmem [shape: f32[2,6,256], index: 2, kind: output, shape index: {}]  }
   0x1   :  { %8 = vsyncpa [#allocation5], 0  ;;  %s142_s9 = smov [#allocation2]   ;;  %s143_s11 = smov [#allocation4]  }
   0x2   :  { %s15_s10 = sshll.u32 %s142_s9, 4  ;;  %s24_s12 = sshll.u32 %s143_s11, 4  ;;  %s16_s10 = int_to_ptr.vmem [resolvable:$true] %s15_s10  ;;  %s161_s12 = int_to_ptr.vmem [resolvable:$true] %s24_s12 }
   0x3   :  { %s94_s15 = scalar_lea.hbm %s216_s0, 64 }
   0x4   :  { %p95_p0 = scmp.ne.s32.totalorder %s216_s0, %s94_s15  ;;  %p98_p1 = scmp.lt.u32.totalorder %s94_s15, %s216_s0 }
   0x6   :  { %p100_p2 = pnand %p98_p1, %p95_p0 }
   0x8   :  { %103 = shalt.err (!%p100_p2)
}
   0x9   :  { %s104_s20 = scalar_lea.vmem %s16_s10, 64  ;;  %p109_p4 = scmp.lt.s32.totalorder %s16_s10, %s16_s10 }
   0xa   :  { %p105_p3 = scmp.ne.s32.totalorder %s16_s10, %s104_s20  ;;  %p110_p5 = scmp.lt.s32.totalorder %s104_s20, %s104_s20 }
   0xc   :  { %p111_p6 = por %p110_p5, %p109_p4 }
   0xe   :  { %p112_p7 = pnand %p111_p6, %p105_p3 }
  0x10   :  { %115 = shalt.err (!%p112_p7)
}
  0x11   :  { %18 = dma.hbm_to_vmem [thread:$0]  %s216_s0, 64, %s16_s10, [#allocation3]  }
  0x12   :  { %s116_s25 = scalar_lea.hbm %s217_s1, 256 }
  0x13   :  { %p117_p8 = scmp.ne.s32.totalorder %s217_s1, %s116_s25  ;;  %p120_p9 = scmp.lt.u32.totalorder %s116_s25, %s217_s1 }
  0x15   :  { %p122_p10 = pnand %p120_p9, %p117_p8 }
  0x17   :  { %125 = shalt.err (!%p122_p10)
}
  0x18   :  { %s126_s30 = scalar_lea.vmem %s161_s12, 256  ;;  %p131_p12 = scmp.lt.s32.totalorder %s161_s12, %s161_s12 }
  0x19   :  { %p127_p11 = scmp.ne.s32.totalorder %s161_s12, %s126_s30  ;;  %p132_p13 = scmp.lt.s32.totalorder %s126_s30, %s126_s30 }
  0x1b   :  { %p133_p0 = por %p132_p13, %p131_p12 }
  0x1d   :  { %p134_p1 = pnand %p133_p0, %p127_p11 }
  0x1f   :  { %137 = shalt.err (!%p134_p1)
}
  0x20   :  { %s144_s0 = smov 128   ;;  %s145_s3 = smov 8  }
  0x21   :  { %30 = dma.hbm_to_vmem [thread:$0]  %s217_s1, 256, %s161_s12, [#allocation5], %s144_s0, %s144_s0, %s145_s3  }
  0x22   :  { %138 = dma.done.wait [#allocation3], 64  }
  0x23   :  { %139 = vsyncadd [#allocation3], 4294967232 }
  0x24   :  { %140 = dma.done.wait [#allocation5], 256  }
  0x25   :  { %141 = vsyncadd [#allocation5], 4294967040  ;;  %v37_v0 = vld [vmem:[#allocation4] sm:$0xff]  ;;  %v38_v1 = vld [vmem:[#allocation4 + $0x8] sm:$0xff] }
  0x26   :  { %v84_v2 = vld.sshfl [vmem:[#allocation2] sm:$0x33 pattern:$0x76325410]  ;;  %45 = vst [vmem:[%s218_s2] sm:$0xf] %v37_v0  ;;  %v41_v3 = vcombine.high %v37_v0, %v37_v0  ;;  %v42_v4 = vcombine.high %v38_v1, %v38_v1 }
  0x27   :  { %47 = vst [vmem:[%s218_s2 + $0x10] sm:$0xf] %v38_v1  ;;  %v58_v5 = vcombine.low %v84_v2, %v84_v2  ;;  %62 = vst [vmem:[%s218_s2 + $0x8] sm:$0x30] %v84_v2 }
  0x28   :  { %87 = vst [vmem:[%s218_s2 + $0x18] sm:$0x30] %v84_v2  ;;  %46 = vst [vmem:[%s218_s2 + $0x8] sm:$0xf] %v41_v3 }
  0x29   :  { %48 = vst [vmem:[%s218_s2 + $0x18] sm:$0xf] %v42_v4  ;;  %61 = vst [vmem:[%s218_s2] sm:$0x30] %v58_v5 }
  0x2a   :  { %86 = vst [vmem:[%s218_s2 + $0x10] sm:$0x30] %v58_v5 }
  0x2b   :  { %82 = vsyncpa [#allocation3], 1 }
  0x2c   :  { %83 = vsyncpa [#allocation5], 1 }

</bundles_post_ra>
